<compile_context>
chip_gen: v5e
topology: v5e:2x2
jax: 0.10.0
libtpu: 0.0.40
codegen_flags: <defaults>
</compile_context>

<pallas_src>
from collections import defaultdict

import numpy as np
import jax
import jax.numpy as jnp
from jax import lax
from jax.experimental import pallas as pl
from jax.experimental.pallas import tpu as pltpu

_LANES = 128


def _round_up(x, m):
    return (x + m - 1) // m * m


def _sublane_align(dtype):
    # min sublane tile: f32 -> 8, bf16 -> 16, int8 -> 32
    return max(8, 32 // jnp.dtype(dtype).itemsize)


def _make_kernel(has_mask, n_seg):
    """Builds the kernel body (mask-free variant drops the mask stream)."""

    def kernel(bnd_sm, *refs):
        if has_mask:
            pred_ref, target_ref, mask_ref, out_ref, idx_sc, acc_sc = refs
        else:
            pred_ref, target_ref, out_ref, idx_sc, acc_sc = refs
            mask_ref = None

        b = pl.program_id(0)
        t = pl.program_id(1)
        tr = pred_ref.shape[1]
        g_pad = acc_sc.shape[0]

        @pl.when(t == 0)
        def _init():
            acc_sc[...] = jnp.zeros_like(acc_sc)
            # local element index within a tile (row*128 + lane); reused every
            # tile, with the tile offset folded into the scalar boundaries.
            idx_sc[...] = (
                lax.broadcasted_iota(jnp.int32, (tr, _LANES), 0) * _LANES
                + lax.broadcasted_iota(jnp.int32, (tr, _LANES), 1))

        # squared error for this tile (accumulation / compare in f32)
        diff = pred_ref[0].astype(jnp.float32) - target_ref[0].astype(jnp.float32)
        sq = diff * diff
        if has_mask:
            sq = sq * mask_ref[0].astype(jnp.float32)

        idx = idx_sc[...]                               # (tr, 128) int32
        off = t * (tr * _LANES)                         # tile element offset

        # contiguous segments: ends[g] == starts[g+1], so G+1 ">=" masks suffice
        ge = [idx >= (bnd_sm[b, s] - off) for s in range(n_seg + 1)]

        rows = []
        for s in range(n_seg):                          # static unroll, small G
            member = jnp.logical_and(ge[s], jnp.logical_not(ge[s + 1]))
            # where-select (NOT multiply): ragged-tail garbage can never leak in
            rows.append(jnp.sum(jnp.where(member, sq, 0.0),
                                axis=0, keepdims=True))             # (1, 128)
        if g_pad > n_seg:
            rows.append(jnp.zeros((g_pad - n_seg, _LANES), jnp.float32))
        acc_sc[...] += jnp.concatenate(rows, axis=0)                # (g_pad,128)

        @pl.when(t == pl.num_programs(1) - 1)
        def _done():
            out_ref[...] = acc_sc[...].reshape(1, g_pad, _LANES)

    return kernel


def mse_accuracy(pred, target, indices, indices_type, type_names,
                 acc_name="accuracy_l2", vert_mask=None, tile_rows=2048,
                 cast_bf16=False, mask_dtype=None):
    """JAX/Pallas equivalent of MSEAccuracy.forward (reduction='mean')."""
    bs, n_vert, d = pred.shape
    g = indices.shape[1] - 1                       # segments per batch element
    n_types = len(type_names)
    e = n_vert * d                                 # elements per batch row

    if cast_bf16:
        # Bandwidth halving for this metric; accumulation stays f32 in-kernel.
        pred = pred.astype(jnp.bfloat16)
        target = target.astype(jnp.bfloat16)

    stream_dtypes = [pred.dtype, target.dtype]
    has_mask = vert_mask is not None
    if has_mask:
        # mask_dtype=jnp.int8 (binary masks only) cuts mask bytes 4x; default
        # keeps the exact multiplicative-weight semantics of the reference.
        m_dt = jnp.dtype(mask_dtype) if mask_dtype is not None else jnp.dtype(pred.dtype)
        stream_dtypes.append(m_dt)

    align = max(_sublane_align(dt) for dt in stream_dtypes)

    # pad the element axis only up to the minimum sublane tile (skip if aligned)
    e_pad = _round_up(e, align * _LANES)
    n_rows = e_pad // _LANES
    tr = min(_round_up(tile_rows, align), n_rows)
    n_tiles = pl.cdiv(n_rows, tr)                  # last tile may be ragged

    def _prep(x2d):
        if e_pad != e:
            x2d = jnp.pad(x2d, ((0, 0), (0, e_pad - e)))
        return x2d.reshape(bs, n_rows, _LANES)

    pred3 = _prep(pred.reshape(bs, e))
    target3 = _prep(target.reshape(bs, e))
    operands = [pred3, target3]
    if has_mask:
        # TODO(synk): the per-vertex -> per-element mask expansion is one extra
        # wrapper HBM pass; an in-kernel gather (idx // d) could remove it.
        vm = vert_mask.reshape(bs, n_vert, 1).astype(m_dt)
        mask3 = _prep(jnp.broadcast_to(vm, (bs, n_vert, d)).reshape(bs, e))
        operands.append(mask3)

    # element-space segment boundaries (G+1 per batch row), SMEM scalar prefetch
    bnd = indices.astype(jnp.int32) * d            # (bs, G+1)

    g_pad = _round_up(g, 8)
    tile_spec = pl.BlockSpec((1, tr, _LANES), lambda b, t, bnd_sm: (b, t, 0))

    lane_sums = pl.pallas_call(
        _make_kernel(has_mask, g),
        out_shape=jax.ShapeDtypeStruct((bs, g_pad, _LANES), jnp.float32),
        grid_spec=pltpu.PrefetchScalarGridSpec(
            num_scalar_prefetch=1,
            grid=(bs, n_tiles),
            in_specs=[tile_spec] * len(operands),
            out_specs=pl.BlockSpec((1, g_pad, _LANES),
                                   lambda b, t, bnd_sm: (b, 0, 0)),
            scratch_shapes=[pltpu.VMEM((tr, _LANES), jnp.int32),
                            pltpu.VMEM((g_pad, _LANES), jnp.float32)]),
        compiler_params=pltpu.CompilerParams(
            dimension_semantics=("parallel", "arbitrary")),
    )(bnd, *operands)

    # ---- tiny glue: lane-sum, per-segment mean, per-type mean
    seg_sums = jnp.sum(lane_sums[:, :g, :], axis=-1)               # (bs, G)
    counts = (indices[:, 1:] - indices[:, :-1]).astype(jnp.float32) * float(d)
    seg_means = jnp.where(counts > 0,
                          seg_sums / jnp.maximum(counts, 1.0),
                          jnp.zeros_like(seg_sums))                # (bs, G)

    type_idx = jnp.argmax(indices_type, axis=-1)                   # (bs, G)
    onehot = jax.nn.one_hot(type_idx, n_types, dtype=jnp.float32)  # (bs, G, T)
    type_sums = jnp.einsum("bg,bgt->t", seg_means, onehot)         # (T,)
    type_cnts = jnp.sum(onehot, axis=(0, 1))                       # (T,)
    type_means = jnp.where(type_cnts > 0,
                           type_sums / jnp.maximum(type_cnts, 1.0),
                           jnp.zeros_like(type_sums))

    return {f"{acc_name}.{name}": type_means[i]
            for i, name in enumerate(type_names)}


def _reference(pred, target, indices, indices_type, type_names, acc_name,
               vert_mask):
    """Pure-numpy re-implementation of accuracy_mse (reduction='mean')."""
    pred = np.asarray(pred, np.float32); target = np.asarray(target, np.float32)
    indices = np.asarray(indices); indices_type = np.asarray(indices_type)
    bs = pred.shape[0]
    acc = defaultdict(list)
    for b in range(bs):
        err = (pred[b] - target[b]) ** 2
        if vert_mask is not None:
            err = err * np.asarray(vert_mask)[b]
        for gidx in range(indices.shape[1] - 1):
            tname = type_names[int(np.argmax(indices_type[b, gidx]))]
            start, end = int(indices[b, gidx]), int(indices[b, gidx + 1])
            acc[tname].append(float(np.mean(err[start:end])))
    out = {}
    for name in type_names:
        key = f"{acc_name}.{name}"
        out[key] = float(np.mean(acc[name])) if name in acc else 0.0
    return out


if __name__ == "__main__":
    key = jax.random.PRNGKey(0)
    bs, n_vert, d = 2, 64, 3          # batch, vertices, xyz features
    g, n_types = 3, 3                 # garments per outfit, garment types
    type_names = ["top", "bottom", "shoes"]

    k1, k2, k3 = jax.random.split(key, 3)
    pred = jax.random.normal(k1, (bs, n_vert, d), dtype=jnp.float32)
    target = jax.random.normal(k2, (bs, n_vert, d), dtype=jnp.float32)
    vert_mask = (jax.random.uniform(k3, (bs, n_vert, 1)) > 0.2).astype(jnp.float32)

    # segment boundary indices per batch element: (bs, G+1)
    indices = jnp.array([[0, 20, 45, 64],
                         [0, 10, 30, 50]], dtype=jnp.int32)
    # one-hot garment types per segment: (bs, G, T)
    type_ids = jnp.array([[0, 1, 2],
                          [1, 1, 0]], dtype=jnp.int32)
    indices_type = jax.nn.one_hot(type_ids, n_types, dtype=jnp.float32)

    # 1) masked, f32 streams (exact path)
    out = mse_accuracy(pred, target, indices, indices_type, type_names,
                       acc_name="accuracy_l2", vert_mask=vert_mask)
    out = {k: jax.block_until_ready(v) for k, v in out.items()}
    ref = _reference(pred, target, indices, indices_type, type_names,
                     "accuracy_l2", vert_mask)
    for k in ref:
        assert np.allclose(float(out[k]), ref[k], rtol=1e-5, atol=1e-5), (
            k, float(out[k]), ref[k])

    # 2) no-mask specialized kernel (2 input streams)
    out_nm = mse_accuracy(pred, target, indices, indices_type, type_names,
                          acc_name="accuracy_l2", vert_mask=None)
    out_nm = {k: jax.block_until_ready(v) for k, v in out_nm.items()}
    ref_nm = _reference(pred, target, indices, indices_type, type_names,
                        "accuracy_l2", None)
    for k in ref_nm:
        assert np.allclose(float(out_nm[k]), ref_nm[k], rtol=1e-5, atol=1e-5), (
            k, float(out_nm[k]), ref_nm[k])

    # 3) bf16-streamed variant (bandwidth option); loose tolerance vs f32 ref
    out_bf = mse_accuracy(pred, target, indices, indices_type, type_names,
                          acc_name="accuracy_l2", vert_mask=vert_mask,
                          cast_bf16=True)
    out_bf = {k: jax.block_until_ready(v) for k, v in out_bf.items()}
    for k in ref:
        assert np.allclose(float(out_bf[k]), ref[k], rtol=5e-2, atol=5e-2), (
            k, float(out_bf[k]), ref[k])

    print("KERNEL_OK")
</pallas_src>

<mosaic_0001>
module attributes {stable_mosaic.version = 11 : i64} {
  func.func @kernel(%arg0: i32, %arg1: i32, %arg2: memref<2x4xi32, #tpu.memory_space<smem>>, %arg3: memref<1x8x128xf32, #tpu.memory_space<vmem>>, %arg4: memref<1x8x128xf32, #tpu.memory_space<vmem>>, %arg5: memref<1x8x128xf32, #tpu.memory_space<vmem>>, %arg6: memref<1x8x128xf32, #tpu.memory_space<vmem>>, %arg7: memref<8x128xi32, #tpu.memory_space<vmem>>, %arg8: memref<8x128xf32, #tpu.memory_space<vmem>>) attributes {dimension_semantics = [#tpu.dimension_semantics<parallel>, #tpu.dimension_semantics<arbitrary>], iteration_bounds = array<i64: 2, 1>, scalar_prefetch = 1 : i64, scratch_operands = 2 : i64, tpu.core_type = #tpu.core_type<tc>, window_params = [{transform_indices = @transform_0, window_bounds = array<i64: 1, 8, 128>}, {transform_indices = @transform_1, window_bounds = array<i64: 1, 8, 128>}, {transform_indices = @transform_2, window_bounds = array<i64: 1, 8, 128>}, {transform_indices = @transform_3, window_bounds = array<i64: 1, 8, 128>}]} {
    %c0_i32 = arith.constant 0 : i32
    %0 = arith.cmpi eq, %arg1, %c0_i32 : i32
    %1 = arith.extui %0 : i1 to i32
    %c0_i32_0 = arith.constant 0 : i32
    %2 = arith.cmpi ne, %1, %c0_i32_0 : i32
    scf.if %2 {
      %cst_27 = arith.constant 0.000000e+00 : f32
      %60 = vector.broadcast %cst_27 : f32 to vector<8x128xf32>
      %c0_28 = arith.constant 0 : index
      %c0_29 = arith.constant 0 : index
      %61 = vector.load %arg8[%c0_28, %c0_29] : memref<8x128xf32, #tpu.memory_space<vmem>>, vector<8x128xf32>
      tpu.vector_store %arg8[%c0_28, %c0_29], %60 {strides = array<i32>} : memref<8x128xf32, #tpu.memory_space<vmem>>, vector<8x128xf32>,
      %62 = tpu.iota {dimensions = array<i32: 0>} : vector<8x128xi32>
      %c128_i32 = arith.constant 128 : i32
      %63 = vector.broadcast %c128_i32 : i32 to vector<8x128xi32>
      %64 = arith.muli %62, %63 : vector<8x128xi32>
      %65 = tpu.iota {dimensions = array<i32: 1>} : vector<8x128xi32>
      %66 = arith.addi %64, %65 : vector<8x128xi32>
      %c0_30 = arith.constant 0 : index
      %c0_31 = arith.constant 0 : index
      %67 = vector.load %arg7[%c0_30, %c0_31] : memref<8x128xi32, #tpu.memory_space<vmem>>, vector<8x128xi32>
      tpu.vector_store %arg7[%c0_30, %c0_31], %66 {strides = array<i32>} : memref<8x128xi32, #tpu.memory_space<vmem>>, vector<8x128xi32>,
    } else {
    }
    %c0 = arith.constant 0 : index
    %c0_1 = arith.constant 0 : index
    %c0_2 = arith.constant 0 : index
    %3 = vector.load %arg3[%c0, %c0_1, %c0_2] : memref<1x8x128xf32, #tpu.memory_space<vmem>>, vector<1x8x128xf32>
    %4 = vector.shape_cast %3 : vector<1x8x128xf32> to vector<8x128xf32>
    %c0_3 = arith.constant 0 : index
    %c0_4 = arith.constant 0 : index
    %c0_5 = arith.constant 0 : index
    %5 = vector.load %arg4[%c0_3, %c0_4, %c0_5] : memref<1x8x128xf32, #tpu.memory_space<vmem>>, vector<1x8x128xf32>
    %6 = vector.shape_cast %5 : vector<1x8x128xf32> to vector<8x128xf32>
    %7 = arith.subf %4, %6 : vector<8x128xf32>
    %8 = arith.mulf %7, %7 : vector<8x128xf32>
    %c0_6 = arith.constant 0 : index
    %c0_7 = arith.constant 0 : index
    %c0_8 = arith.constant 0 : index
    %9 = vector.load %arg5[%c0_6, %c0_7, %c0_8] : memref<1x8x128xf32, #tpu.memory_space<vmem>>, vector<1x8x128xf32>
    %10 = vector.shape_cast %9 : vector<1x8x128xf32> to vector<8x128xf32>
    %11 = arith.mulf %8, %10 : vector<8x128xf32>
    %c0_9 = arith.constant 0 : index
    %c0_10 = arith.constant 0 : index
    %12 = vector.load %arg7[%c0_9, %c0_10] : memref<8x128xi32, #tpu.memory_space<vmem>>, vector<8x128xi32>
    %c1024_i32 = arith.constant 1024 : i32
    %13 = arith.muli %arg1, %c1024_i32 : i32
    %14 = arith.index_cast %arg0 : i32 to index
    %c0_11 = arith.constant 0 : index
    %15 = memref.load %arg2[%14, %c0_11] : memref<2x4xi32, #tpu.memory_space<smem>>
    %16 = arith.subi %15, %13 : i32
    %17 = vector.broadcast %16 : i32 to vector<8x128xi32>
    %18 = arith.cmpi sge, %12, %17 : vector<8x128xi32>
    %19 = arith.index_cast %arg0 : i32 to index
    %c1 = arith.constant 1 : index
    %20 = memref.load %arg2[%19, %c1] : memref<2x4xi32, #tpu.memory_space<smem>>
    %21 = arith.subi %20, %13 : i32
    %22 = vector.broadcast %21 : i32 to vector<8x128xi32>
    %23 = arith.cmpi sge, %12, %22 : vector<8x128xi32>
    %24 = arith.index_cast %arg0 : i32 to index
    %c2 = arith.constant 2 : index
    %25 = memref.load %arg2[%24, %c2] : memref<2x4xi32, #tpu.memory_space<smem>>
    %26 = arith.subi %25, %13 : i32
    %27 = vector.broadcast %26 : i32 to vector<8x128xi32>
    %28 = arith.cmpi sge, %12, %27 : vector<8x128xi32>
    %29 = arith.index_cast %arg0 : i32 to index
    %c3 = arith.constant 3 : index
    %30 = memref.load %arg2[%29, %c3] : memref<2x4xi32, #tpu.memory_space<smem>>
    %31 = arith.subi %30, %13 : i32
    %32 = vector.broadcast %31 : i32 to vector<8x128xi32>
    %33 = arith.cmpi sge, %12, %32 : vector<8x128xi32>
    %cst = arith.constant dense<true> : vector<8x128xi1>
    %34 = arith.xori %23, %cst : vector<8x128xi1>
    %35 = arith.andi %18, %34 : vector<8x128xi1>
    %cst_12 = arith.constant 0.000000e+00 : f32
    %36 = vector.broadcast %cst_12 : f32 to vector<8x128xf32>
    %37 = arith.select %35, %11, %36 : vector<8x128xi1>, vector<8x128xf32>
    %cst_13 = arith.constant dense<0.000000e+00> : vector<128xf32>
    %38 = vector.multi_reduction <add>, %37, %cst_13 [0] : vector<8x128xf32> to vector<128xf32>
    %39 = vector.shape_cast %38 : vector<128xf32> to vector<1x128xf32>
    %cst_14 = arith.constant dense<true> : vector<8x128xi1>
    %40 = arith.xori %28, %cst_14 : vector<8x128xi1>
    %41 = arith.andi %23, %40 : vector<8x128xi1>
    %cst_15 = arith.constant 0.000000e+00 : f32
    %42 = vector.broadcast %cst_15 : f32 to vector<8x128xf32>
    %43 = arith.select %41, %11, %42 : vector<8x128xi1>, vector<8x128xf32>
    %cst_16 = arith.constant dense<0.000000e+00> : vector<128xf32>
    %44 = vector.multi_reduction <add>, %43, %cst_16 [0] : vector<8x128xf32> to vector<128xf32>
    %45 = vector.shape_cast %44 : vector<128xf32> to vector<1x128xf32>
    %cst_17 = arith.constant dense<true> : vector<8x128xi1>
    %46 = arith.xori %33, %cst_17 : vector<8x128xi1>
    %47 = arith.andi %28, %46 : vector<8x128xi1>
    %cst_18 = arith.constant 0.000000e+00 : f32
    %48 = vector.broadcast %cst_18 : f32 to vector<8x128xf32>
    %49 = arith.select %47, %11, %48 : vector<8x128xi1>, vector<8x128xf32>
    %cst_19 = arith.constant dense<0.000000e+00> : vector<128xf32>
    %50 = vector.multi_reduction <add>, %49, %cst_19 [0] : vector<8x128xf32> to vector<128xf32>
    %51 = vector.shape_cast %50 : vector<128xf32> to vector<1x128xf32>
    %cst_20 = arith.constant 0.000000e+00 : f32
    %52 = vector.broadcast %cst_20 : f32 to vector<5x128xf32>
    %c0_21 = arith.constant 0 : index
    %c0_22 = arith.constant 0 : index
    %53 = vector.load %arg8[%c0_21, %c0_22] : memref<8x128xf32, #tpu.memory_space<vmem>>, vector<8x128xf32>
    %54 = tpu.concatenate %39, %45, %51, %52 in 0 : vector<1x128xf32>, vector<1x128xf32>, vector<1x128xf32>, vector<5x128xf32> -> vector<8x128xf32>
    %55 = arith.addf %53, %54 : vector<8x128xf32>
    %c0_23 = arith.constant 0 : index
    %c0_24 = arith.constant 0 : index
    %56 = vector.load %arg8[%c0_23, %c0_24] : memref<8x128xf32, #tpu.memory_space<vmem>>, vector<8x128xf32>
    tpu.vector_store %arg8[%c0_23, %c0_24], %55 {strides = array<i32>} : memref<8x128xf32, #tpu.memory_space<vmem>>, vector<8x128xf32>,
    %c0_i32_25 = arith.constant 0 : i32
    %57 = arith.cmpi eq, %arg1, %c0_i32_25 : i32
    %58 = arith.extui %57 : i1 to i32
    %c0_i32_26 = arith.constant 0 : i32
    %59 = arith.cmpi ne, %58, %c0_i32_26 : i32
    scf.if %59 {
      %c0_27 = arith.constant 0 : index
      %c0_28 = arith.constant 0 : index
      %60 = vector.load %arg8[%c0_27, %c0_28] : memref<8x128xf32, #tpu.memory_space<vmem>>, vector<8x128xf32>
      %61 = vector.shape_cast %60 : vector<8x128xf32> to vector<1x8x128xf32>
      %c0_29 = arith.constant 0 : index
      %c0_30 = arith.constant 0 : index
      %c0_31 = arith.constant 0 : index
      %62 = vector.load %arg6[%c0_29, %c0_30, %c0_31] : memref<1x8x128xf32, #tpu.memory_space<vmem>>, vector<1x8x128xf32>
      tpu.vector_store %arg6[%c0_29, %c0_30, %c0_31], %61 {strides = array<i32>} : memref<1x8x128xf32, #tpu.memory_space<vmem>>, vector<1x8x128xf32>,
    } else {
    }
    return
  }
  func.func @transform_0(%arg0: i32, %arg1: i32, %arg2: memref<2x4xi32, #tpu.memory_space<smem>>) -> (i32, i32, i32) {
    %c0_i32 = arith.constant 0 : i32
    %c0_i32_0 = arith.constant 0 : i32
    return %arg0, %arg1, %c0_i32 : i32, i32, i32
  }
  func.func @transform_1(%arg0: i32, %arg1: i32, %arg2: memref<2x4xi32, #tpu.memory_space<smem>>) -> (i32, i32, i32) {
    %c0_i32 = arith.constant 0 : i32
    %c0_i32_0 = arith.constant 0 : i32
    return %arg0, %arg1, %c0_i32 : i32, i32, i32
  }
  func.func @transform_2(%arg0: i32, %arg1: i32, %arg2: memref<2x4xi32, #tpu.memory_space<smem>>) -> (i32, i32, i32) {
    %c0_i32 = arith.constant 0 : i32
    %c0_i32_0 = arith.constant 0 : i32
    return %arg0, %arg1, %c0_i32 : i32, i32, i32
  }
  func.func @transform_3(%arg0: i32, %arg1: i32, %arg2: memref<2x4xi32, #tpu.memory_space<smem>>) -> (i32, i32, i32) {
    %c0_i32 = arith.constant 0 : i32
    %c0_i32_0 = arith.constant 0 : i32
    %c0_i32_1 = arith.constant 0 : i32
    return %arg0, %c0_i32, %c0_i32_0 : i32, i32, i32
  }
}

</mosaic_0001>

<bundles_post_ra>
// kernel: tpu_custom_call.1
= control target key start
LH: loop header
LB: loop body
LE: loop exit
PB: predicated region body
PF: predicated region fallthrough
CT: control target
= control target key end

     0   :  { %s800_s18 = smov [#allocation5]   ;;  %s997_s0 = inlined_call_operand.hbm [shape: s32[2,4], index: 0, kind: input, shape index: {}]   ;;  %s998_s1 = inlined_call_operand.hbm [shape: f32[2,8,128], index: 1, kind: input, shape index: {}]   ;;  %s999_s2 = inlined_call_operand.hbm [shape: f32[2,8,128], index: 2, kind: input, shape index: {}]   ;;  %s1000_s3 = inlined_call_operand.hbm [shape: f32[2,8,128], index: 3, kind: input, shape index: {}]   ;;  %s1001_s4 = inlined_call_operand.hbm [shape: f32[2,8,128], index: 4, kind: output, shape index: {}]  }
   0x1   :  { %1004 = sst [smem:[#allocation20_spill]] %s999_s2  ;;  %s10_s17 = sshll.u32 %s997_s0, 4  ;;  %s11_s17 = int_to_ptr.hbm [resolvable:$true] %s10_s17 }
   0x2   :  { %13 = dma.hbm_to_smem %s11_s17, 32, %s800_s18, [#allocation4] }
   0x3   :  { %762 = dma.done.wait [#allocation4], 32 }
   0x4   :  { %763 = vsyncadd [#allocation4], 4294967264 }
   0x5   :  { %16 = sfence }
   0x6   :  { %17 = vsyncpa [#allocation7], 0 }
   0x7   :  { %19 = vsyncpa [#allocation7 + $0x1], 0 }
   0x8   :  { %20 = vsyncpa [#allocation10], 0 }
   0x9   :  { %22 = vsyncpa [#allocation10 + $0x1], 0 }
   0xa   :  { %23 = vsyncpa [#allocation8], 0 }
   0xb   :  { %25 = vsyncpa [#allocation8 + $0x1], 0  ;;  %s830_s19 = smov 0   ;;  %s832_s20 = smov 0  }
   0xc   :  { %s834_s21 = smov 0   ;;  %s836_s22 = smov 0  }
   0xd   :  { %s838_s0 = smov 0   ;;  %s840_s23 = smov 0  }
   0xe LB: > { %1005 = sst [smem:[#allocation17_spill]] %s794_s0  ;;  %s861_s24 = sadd.s32 4294967295, %s798_s23   ;;  %s798_s23 = sphi %s840_s23, %s31_s23   ;;  %s794_s0 = sphi %s838_s0, %s1019_s0   ;;  %s790_s22 = sphi %s836_s22, %s1018_s22   ;;  %s786_s21 = sphi %s834_s21, %s1022_s21   ;;  %s782_s20 = sphi %s832_s20, %s1021_s20   ;;  %s778_s19 = sphi %s830_s19, %s1020_s19  }
   0xf   : > { %s515_s25 = sadd.s32 4294967294, %s798_s23   ;;  %s43_s26 = sadd.s32 1, %s794_s0 }
  0x10   : > { %s52_s27 = sadd.s32 1, %s786_s21  ;;  %p45_p0 = scmp.ge.s32.totalorder %s43_s26, 2 }
  0x11   : > { %p59_p1 = scmp.ne.s32.totalorder %s786_s21, %s782_s20  ;;  %p60_p2 = scmp.eq.s32.totalorder %s798_s23, 0 }
  0x12   : > { %p65_p3 = scmp.ne.s32.totalorder %s782_s20, %s778_s19  ;;  %s1024_s26 = smov (%p45_p0, %s43_s26), 0 }
  0x13   : > { %1006 = sst [smem:[#allocation18_spill]] %s1024_s26  ;;  %p873_p4 = por %p60_p2, %p59_p1 }
  0x14   : > { %p66_p5 = scmp.eq.s32.totalorder %s861_s24, 0  ;;  %s47_s29 = ssub.s32 %s794_s0, %s1024_s26 }
  0x15   : > { %p145_p6 = scmp.eq.s32.totalorder %s861_s24, 1  ;;  %p50_p7 = scmp.eq.s32.totalorder %s47_s29, 0 }
  0x16   : > { %p881_p8 = por %p66_p5, %p65_p3  ;;  %p151_p10 = scmp.eq.s32.totalorder %s515_s25, 1 }
  0x17   : > { %p885_p9 = por %p145_p6, %p59_p1  ;;  %p517_p12 = scmp.ge.s32.totalorder %s798_s23, 2 }
  0x18   : > { %s890_s6 = scalar_select %p50_p7, %s786_s21, %s52_s27  }
  0x19   : > { %p892_p11 = por %p151_p10, %p65_p3  ;;  %p556_p13 = scmp.lt.s32.totalorder %s798_s23, 2 }
  0x1a   : > { %1010 = sst [smem:[#allocation19_spill]] %s890_s6  ;;  %s171_s8 = sand.u32 1, %s786_s21  }
  0x1b   : > { %s518_s9 = sshll.u32 %s171_s8, 3  ;;  %s519_s10 = sshll.u32 %s794_s0, 3 }
  0x1c   : > { %p902_p0 = pnand %p556_p13, %p873_p4  ;;  %s191_s12 = sand.u32 1, %s798_s23  }
  0x1d   : > { %s1013_s2 = sld [smem:[#allocation20_spill]]  ;;  %s195_s17 = scalar_lea.vmem [#allocation9], %s518_s9 }
  0x1e   : > { %s204_s18 = sshll.u32 %s195_s17, 4  ;;  %s192_s25 = scalar_lea.sflag [#allocation10], %s191_s12  ;;  %s205_s18 = int_to_ptr.vmem [resolvable:$true] %s204_s18 }
  0x1f   : > { %p524_p1 = scmp.ge.s32.totalorder %s798_s23, 1  ;;  %p229_p2 = scmp.lt.s32.totalorder %s798_s23, 3 }
  0x20   : > { %s180_s13 = scalar_lea.hbm %s998_s1, %s519_s10  ;;  %s172_s17 = scalar_lea.sflag [#allocation7], %s171_s8 }
  0x21   : > { %p914_p3 = pnand %p524_p1, %p229_p2  ;;  %s182_s14 = sshll.u32 %s180_s13, 4  ;;  %s183_s14 = int_to_ptr.hbm [resolvable:$true] %s182_s14 }
  0x22   : > { %s215_s0 = scalar_lea.vmem [#allocation11], %s518_s9  ;;  %s931_s28 = sand.u32 (!%p914_p3), 1, %s782_s20  }
  0x23   : > { %s200_s15 = scalar_lea.hbm %s1013_s2, %s519_s10  ;;  %s224_s6 = sshll.u32 %s215_s0, 4  ;;  %s225_s6 = int_to_ptr.vmem [resolvable:$true] %s224_s6 }
  0x24   : > { %s202_s16 = sshll.u32 %s200_s15, 4  ;;  %s175_s15 = scalar_lea.vmem [#allocation6], %s518_s9  ;;  %s203_s16 = int_to_ptr.hbm [resolvable:$true] %s202_s16 }
  0x25   : > { %548 = dma.hbm_to_vmem [thread:$0]  (!%p902_p0), %s203_s16, 128, %s205_s18, %s192_s25  }
  0x26   : > { %s184_s2 = sshll.u32 %s175_s15, 4  ;;  %s220_s18 = scalar_lea.hbm %s1000_s3, %s519_s10  ;;  %s185_s2 = int_to_ptr.vmem [resolvable:$true] %s184_s2 }
  0x27   : > { %545 = dma.hbm_to_vmem [thread:$0]  (!%p902_p0), %s183_s14, 128, %s185_s2, %s172_s17  }
  0x28   : > { %s222_s26 = sshll.u32 %s220_s18, 4  ;;  %233 = sbr.rel (%p914_p3) target bundleno = 83 (0x53), region = 32  ;;  %s223_s26 = int_to_ptr.hbm [resolvable:$true] %s222_s26 }
  0x29   : > { %551 = dma.hbm_to_vmem [thread:$0]  (!%p902_p0), %s223_s26, 128, %s225_s6, %s192_s25  }
  0x2a   : > { %s934_s2 = sshll.u32 (!%p914_p3), %s931_s28, 3  ;;  %s236_s8 = scalar_lea.sflag (!%p914_p3), [#allocation7], %s931_s28 }
  0x2b   : > { %s239_s10 = scalar_lea.vmem (!%p914_p3), [#allocation6], %s934_s2 }
  0x2d   : > { %765 = dma.done.wait (%p881_p8), %s236_s8, 128  }
  0x2e   : > { %767 = vsyncadd (%p881_p8), %s236_s8, 4294967168  ;;  %s245_s0 = sand.u32 1, %s861_s24   ;;  %s249_s6 = scalar_lea.vmem [#allocation9], %s934_s2 }
  0x2f   : > { %s246_s26 = scalar_lea.sflag [#allocation10], %s245_s0 }
  0x30   : > { %769 = dma.done.wait (%p881_p8), %s246_s26, 256  }
  0x31   : > { %771 = vsyncadd (%p881_p8), %s246_s26, 4294967040  ;;  %v298_v0 = vlaneseq  ;;  %s529_s9 = sshll.u32 %s790_s22, 7  ;;  %v305_v5 = vld [vmem:[%s239_s10] sm:$0xff]  ;;  %v306_v6 = vld [vmem:[%s249_s6] sm:$0xff]  ;;  %s259_s30 = scalar_lea.vmem [#allocation11], %s934_s2  ;;  %vm801_vm3 = vmmov 1  }
  0x32   : > { %s314_s11 = sld [smem:[#allocation5 + %s529_s9]]  ;;  %s318_s25 = sadd.s32 1, %s529_s9  ;;  %v307_v7 = vsub.f32 %v305_v5, %v306_v6  ;;  %v309_v9 = vld [vmem:[%s259_s30] sm:$0xff]  ;;  %vm361_vm11 = vcmask 1040384   ;;  %vm363_vm12 = vcmask 1041408   ;;  %vm365_vm13 = vcmask 1042432  }
  0x33   : > { %v299_v1 = vshrl.u32 %v298_v0, 7  ;;  %v302_v2 = vand.u32 127, %v298_v0  ;;  %s319_s27 = sld [smem:[#allocation5 + %s318_s25]]  ;;  %s323_s29 = sadd.s32 2, %s529_s9 }
  0x34   : > { %s324_s13 = sld [smem:[#allocation5 + %s323_s29]]  ;;  %s328_s24 = sadd.s32 3, %s529_s9  ;;  %v308_v11 = vmul.f32 %v307_v7, %v307_v7 }
  0x35   : > { %v300_v3 = vmul.u32 128, %v299_v1  ;;  %s329_s14 = sld [smem:[#allocation5 + %s328_s24]]  ;;  %s531_s15 = sshll.u32 %s790_s22, 3 }
  0x36   : > { %v310_v15 = vmul.f32 %v309_v9, %v308_v11  ;;  %s385_s16 = scalar_lea.hbm %s1001_s4, %s531_s15  ;;  %s292_s18 = scalar_lea.vmem [#allocation12], %s934_s2 }
  0x37   : > { %v303_v4 = vadd.s32 %v302_v2, %v300_v3  ;;  %s387_s8 = sshll.u32 %s292_s18, 4  ;;  %s389_s10 = sshll.u32 %s385_s16, 4  ;;  %s388_s8 = int_to_ptr.vmem [resolvable:$true] %s387_s8  ;;  %s390_s10 = int_to_ptr.hbm [resolvable:$true] %s389_s10 }
  0x38   : > { %v316_v8 = vstv %s314_s11  ;;  %s375_s22 = scalar_lea.sflag [#allocation8], %s931_s28  ;;  %s724_s0 = sshra.s32 %s390_s10, 4  ;;  %s725_s0 = int_to_ptr.hbm [resolvable:$true] %s724_s0 }
  0x39   : > { %vm317_vm0 = vcmp.ge.s32.totalorder %v303_v4, %v316_v8  ;;  %v321_v10 = vstv %s319_s27  ;;  %s726_s26 = scalar_lea.hbm %s725_s0, 8  ;;  %s730_s9 = scalar_lea.hbm %s1001_s4, 16 }
  0x3a   : > { %vm322_vm1 = vcmp.ge.s32.totalorder %v303_v4, %v321_v10  ;;  %v326_v12 = vstv %s324_s13  ;;  %p727_p4 = scmp.ne.s32.totalorder %s725_s0, %s726_s26  ;;  %p731_p7 = scmp.lt.s32.totalorder %s725_s0, %s1001_s4 }
  0x3b   : > { %vm950_vm2 = vcmp.ge.s32.totalorder %v303_v4, %v326_v12  ;;  %v331_v14 = vstv %s329_s14  ;;  %vm333_vm4 = vmxor %vm322_vm1, %vm801_vm3  ;;  %p732_p8 = scmp.lt.s32.totalorder %s730_s9, %s726_s26 }
  0x3c   : > { %vm332_vm5 = vcmp.ge.s32.totalorder %v303_v4, %v331_v14  ;;  %vm334_vm6 = vmand %vm317_vm0, %vm333_vm4  ;;  %p728_p5 = pnand %p727_p4, %p885_p9 }
  0x3d   : > { %vm342_vm7 = vmxor %vm950_vm2, %vm801_vm3  ;;  %v335_v16 = vsel %vm334_vm6, %v310_v15, 0.0  ;;  %p733_p10 = por %p732_p8, %p731_p7 }
  0x3e   : > { %vm343_vm8 = vmand %vm322_vm1, %vm342_vm7  ;;  %v336_v17 = vrot.slane %v335_v16, 4  ;;  %p729_p6 = pneg %p728_p5 }
  0x3f   : > { %v344_v18 = vsel %vm343_vm8, %v310_v15, 0.0  ;;  %vm351_vm9 = vmxor %vm332_vm5, %vm801_vm3 }
  0x40   : > { %v345_v19 = vrot.slane %v344_v18, 4  ;;  %vm352_vm10 = vmand %vm950_vm2, %vm351_vm9  ;;  %v337_v20 = vadd.f32 %v336_v17, %v335_v16  ;;  %p734_p13 = pnand %p733_p10, %p729_p6 }
  0x41   : > { %v353_v21 = vsel %vm352_vm10, %v310_v15, 0.0 }
  0x42   : > { %v346_v22 = vadd.f32 %v345_v19, %v344_v18  ;;  %v354_v23 = vrot.slane %v353_v21, 4  ;;  %v338_v24 = vrot.slane %v337_v20, 2 }
  0x44   : > { %v347_v25 = vrot.slane %v346_v22, 2  ;;  %v355_v26 = vadd.f32 %v354_v23, %v353_v21  ;;  %v339_v27 = vadd.f32 %v338_v24, %v337_v20 }
  0x46   : > { %v348_v28 = vadd.f32 %v347_v25, %v346_v22  ;;  %v356_v29 = vrot.slane %v355_v26, 2  ;;  %v340_v30 = vrot.slane %v339_v27, 1 }
  0x48   : > { %v349_v31 = vrot.slane %v348_v28, 1  ;;  %v357_v32 = vadd.f32 %v356_v29, %v355_v26  ;;  %v341_v33 = vadd.f32 %v340_v30, %v339_v27 }
  0x4a   : > { %v350_v34 = vadd.f32 %v349_v31, %v348_v28  ;;  %v358_v35 = vrot.slane %v357_v32, 1 }
  0x4c   : > { %v359_v36 = vadd.f32 %v358_v35, %v357_v32  ;;  %v362_v37 = vsel %vm361_vm11, %v341_v33, %v350_v34 }
  0x4e   : > { %v364_v38 = vsel %vm363_vm12, %v362_v37, %v359_v36 }
  0x4f   : > { %v366_v39 = vsel %vm365_vm13, %v364_v38, 0.0 }
  0x50   : > { %373 = vst [vmem:[%s292_s18] sm:$0xff] %v366_v39 }
  0x51   : > { %737 = shalt.err (!%p734_p13)
}
  0x52   : > { %540 = dma.vmem_to_hbm [thread:$0]  (%p885_p9), %s388_s8, 128, %s390_s10, %s375_s22  }
  0x53 PF: > { %s401_s28 = sand.u32 1, %s778_s19   ;;  %p553_p0 = pnand %p517_p12, %p892_p11 }
  0x54   : > { %s402_s27 = scalar_lea.sflag [#allocation8], %s401_s28 }
  0x55   : > { %p554_p1 = pneg %p553_p0 }
  0x57   : > { %773 = dma.done.wait (%p554_p1), %s402_s27, 128  }
  0x58   : > { %775 = vsyncadd (%p554_p1), %s402_s27, 4294967168  ;;  %s31_s23 = sadd.s32 1, %s798_s23   ;;  %s1017_s29 = sld [smem:[#allocation19_spill]] }
  0x59   : > { %p28_p2 = scmp.ge.s32.totalorder %s31_s23, 4   ;;  %s1018_s22 = sld [smem:[#allocation17_spill]] }
  0x5a   : > { %s1019_s0 = sld [smem:[#allocation18_spill]]  ;;  %s1020_s19 = smov %s782_s20 }
  0x5b   : > { %s1021_s20 = smov %s786_s21  ;;  %30 = sbr.rel (!%p28_p2) target bundleno = 14 (0xe), region = 109 }
  0x5e   : > { %s1022_s21 = smov %s1017_s29 }
  0x60   :  { %408 = vsyncpa [#allocation7], 1 }
  0x61   :  { %410 = vsyncpa [#allocation7 + $0x1], 1 }
  0x62   :  { %411 = vsyncpa [#allocation10], 1 }
  0x63   :  { %413 = vsyncpa [#allocation10 + $0x1], 1 }
  0x64   :  { %414 = vsyncpa [#allocation8], 1 }
  0x65   :  { %416 = vsyncpa [#allocation8 + $0x1], 1 }

</bundles_post_ra>
